<compile_context>
chip_gen: v6e
topology: v6e:2x2x1
jax: 0.10.0
libtpu: 0.0.40
codegen_flags: <defaults>
</compile_context>

<pallas_src>
import functools

import jax
import jax.numpy as jnp
from jax.experimental import pallas as pl
from jax.experimental.pallas import tpu as pltpu


def _selfnorm_kernel(x_ref, p_ref, o_ref, *, hw):
    x = x_ref[...].astype(jnp.float32)                      # [BLK, HW]

    # per-(b,c) spatial statistics; torch.var defaults to unbiased (N-1).
    mean = jnp.mean(x, axis=-1, keepdims=True)              # [BLK, 1]
    centered = x - mean                                     # dead after var
    inv_nm1 = 1.0 / float(max(hw - 1, 1))                   # guard hw == 1
    var = jnp.sum(centered * centered, axis=-1, keepdims=True) * inv_nm1
    std = jnp.sqrt(var + 1e-5)                              # [BLK, 1]

    # packed FC parameters: rows 0-3 = mean branch, 4-7 = std branch,
    # rows 8/9 hold the scalar output biases broadcast along 16 lanes.
    p = p_ref[...]                                          # [10, 16] f32
    w1m0, w1m1, b1m, w2m = p[0:1, :], p[1:2, :], p[2:3, :], p[3:4, :]
    w1s0, w1s1, b1s, w2s = p[4:5, :], p[5:6, :], p[6:7, :], p[7:8, :]
    b2m = p[8:9, 0:1]                                       # [1, 1]
    b2s = p[9:10, 0:1]                                      # [1, 1]

    # fc_mean: Linear(2,16) -> ReLU -> Linear(16,1) -> Sigmoid  (VPU form)
    hm = jnp.maximum(mean * w1m0 + std * w1m1 + b1m, 0.0)                 # [BLK, 16]
    mw = jax.nn.sigmoid(jnp.sum(hm * w2m, axis=-1, keepdims=True) + b2m)  # [BLK, 1]

    # fc_std: Linear(2,16) -> ReLU -> Linear(16,1) -> Sigmoid
    hs = jnp.maximum(mean * w1s0 + std * w1s1 + b1s, 0.0)                 # [BLK, 16]
    sw = jax.nn.sigmoid(jnp.sum(hs * w2s, axis=-1, keepdims=True) + b2s)  # [BLK, 1]

    # (x-mean)/std * (std*sw) + mean*mw  ==  x*sw + mean*(mw - sw)
    o_ref[...] = (x * sw + mean * (mw - sw)).astype(o_ref.dtype)


def _vmem_config():
    """(buffer_budget_bytes, vmem_limit_bytes) per chip generation."""
    try:
        phys = int(pltpu.get_tpu_info().vmem_capacity_bytes)
    except Exception:
        phys = 64 * 1024 * 1024                 # conservative (v7x-sized)
    if phys >= 100 * 1024 * 1024:               # v5e / v6e: 128 MiB VMEM
        return 64 * 1024 * 1024, 96 * 1024 * 1024
    # v7x (64 MiB per TC) or unknown: leave headroom below the physical cap.
    return 40 * 1024 * 1024, 56 * 1024 * 1024


def _choose_blk(bc, hw, itemsize, budget):
    """Largest row tile (multiple of 8) whose full VMEM footprint fits budget.

    Per-row cost = double-buffered in tile + double-buffered out tile at the
    input dtype, plus ~2 full-width f32 intermediates materialized in-kernel
    (x.astype(f32) and the centered temp).
    """
    per_row = 4 * hw * itemsize + 2 * hw * 4
    blk = max(8, (budget // per_row) // 8 * 8)
    # Keep >= 2 grid blocks whenever BC > 8 so the "parallel" grid axis can
    # shard across both TensorCores on v7x (and pipelines better everywhere).
    half = -(-bc // 2)                  # ceil(bc / 2)
    half = -(-half // 8) * 8            # round up to a multiple of 8
    return min(blk, max(8, half))


def _pack_params(params):
    """Pack the 8 tiny FC tensors into one [10, 16] f32 array (one DMA)."""
    rows = [
        params["w1m"][0, :], params["w1m"][1, :], params["b1m"][0, :],
        params["w2m"][:, 0],
        params["w1s"][0, :], params["w1s"][1, :], params["b1s"][0, :],
        params["w2s"][:, 0],
        jnp.full((16,), params["b2m"][0, 0], jnp.float32),
        jnp.full((16,), params["b2s"][0, 0], jnp.float32),
    ]
    return jnp.stack(rows, axis=0).astype(jnp.float32)      # [10, 16]


def self_norm_pallas(x, params):
    """x: [B, C, H, W].  params: dict of FC weights (see init_params)."""
    B, C, H, W = x.shape
    BC, HW = B * C, H * W
    x2d = x.reshape(BC, HW)

    budget, vmem_limit = _vmem_config()
    blk = _choose_blk(BC, HW, x.dtype.itemsize, budget)
    # Ragged tail block (BC % blk != 0) is handled by Pallas: OOB stores are
    # dropped and every row is independent, so no pad / slice is needed.
    n_blocks = pl.cdiv(BC, blk)

    packed = _pack_params(params)
    kernel = functools.partial(_selfnorm_kernel, hw=HW)

    out2d = pl.pallas_call(
        kernel,
        out_shape=jax.ShapeDtypeStruct((BC, HW), x.dtype),
        grid_spec=pltpu.PrefetchScalarGridSpec(
            num_scalar_prefetch=0,
            grid=(n_blocks,),
            in_specs=[
                pl.BlockSpec((blk, HW), lambda i: (i, 0)),   # x row tile
                pl.BlockSpec((10, 16), lambda i: (0, 0)),    # packed FC params
            ],
            out_specs=pl.BlockSpec((blk, HW), lambda i: (i, 0)),
        ),
        compiler_params=pltpu.CompilerParams(
            dimension_semantics=("parallel",),
            vmem_limit_bytes=vmem_limit),
    )(x2d, packed)

    return out2d.reshape(B, C, H, W)


def init_params(key):
    """Deterministic init mimicking nn.Linear default (U[-1/sqrt(fan_in), ...])."""
    ks = jax.random.split(key, 8)

    def lin(kw, kb, fan_in, fan_out):
        bound = 1.0 / jnp.sqrt(fan_in)
        w = jax.random.uniform(kw, (fan_in, fan_out), jnp.float32, -bound, bound)
        b = jax.random.uniform(kb, (1, fan_out), jnp.float32, -bound, bound)
        return w, b

    w1m, b1m = lin(ks[0], ks[1], 2, 16)
    w2m, b2m = lin(ks[2], ks[3], 16, 1)
    w1s, b1s = lin(ks[4], ks[5], 2, 16)
    w2s, b2s = lin(ks[6], ks[7], 16, 1)
    return dict(w1m=w1m, b1m=b1m, w2m=w2m, b2m=b2m,
                w1s=w1s, b1s=b1s, w2s=w2s, b2s=b2s)


def self_norm_ref(x, params):
    """Pure-JAX reference matching the PyTorch forward."""
    mean = x.mean(axis=(2, 3))                              # [B, C]
    var = x.var(axis=(2, 3), ddof=1)                        # unbiased, like torch.var
    std = jnp.sqrt(var + 1e-5)
    stats = jnp.stack([mean, std], axis=-1)                 # [B, C, 2]

    def fc(s, w1, b1, w2, b2):
        h = jnp.maximum(s @ w1 + b1, 0.0)
        return jax.nn.sigmoid(h @ w2 + b2)                  # [B, C, 1]

    mw = fc(stats, params["w1m"], params["b1m"], params["w2m"], params["b2m"])
    sw = fc(stats, params["w1s"], params["b1s"], params["w2s"], params["b2s"])

    mean_ = mean[:, :, None, None]
    std_ = std[:, :, None, None]
    mw_ = mw[:, :, :, None]
    sw_ = sw[:, :, :, None]
    x_norm = (x - mean_) / std_
    return x_norm * (std_ * sw_) + mean_ * mw_


if __name__ == "__main__":
    key = jax.random.PRNGKey(0)
    kx, kx2, kp = jax.random.split(key, 3)
    params = init_params(kp)

    # Shape matching the module spec (BC divides the row tile exactly).
    B, C, H, W = 2, 4, 16, 16
    x = jax.random.normal(kx, (B, C, H, W), jnp.float32)
    out = jax.block_until_ready(self_norm_pallas(x, params))
    ref = self_norm_ref(x, params)
    assert out.shape == (B, C, H, W)
    assert jnp.allclose(out, ref, atol=1e-5, rtol=1e-5), (
        float(jnp.max(jnp.abs(out - ref))))

    # Shape exercising the un-padded ragged tail block (BC = 10, blk = 8).
    B2, C2 = 2, 5
    x2 = jax.random.normal(kx2, (B2, C2, H, W), jnp.float32)
    out2 = jax.block_until_ready(self_norm_pallas(x2, params))
    ref2 = self_norm_ref(x2, params)
    assert out2.shape == (B2, C2, H, W)
    assert jnp.allclose(out2, ref2, atol=1e-5, rtol=1e-5), (
        float(jnp.max(jnp.abs(out2 - ref2))))

    print("KERNEL_OK")
</pallas_src>

<mosaic_0001>
module attributes {stable_mosaic.version = 11 : i64} {
  func.func @_selfnorm_kernel(%arg0: i32, %arg1: memref<8x256xf32, #tpu.memory_space<vmem>>, %arg2: memref<10x16xf32, #tpu.memory_space<vmem>>, %arg3: memref<8x256xf32, #tpu.memory_space<vmem>>) attributes {dimension_semantics = [#tpu.dimension_semantics<parallel>], iteration_bounds = array<i64: 1>, scalar_prefetch = 0 : i64, scratch_operands = 0 : i64, tpu.core_type = #tpu.core_type<tc>, window_params = [{transform_indices = @transform_0, window_bounds = array<i64: 8, 256>}, {pipeline_mode = #tpu.pipeline_mode<synchronous>, transform_indices = @transform_1, window_bounds = array<i64: 10, 16>}, {transform_indices = @transform_2, window_bounds = array<i64: 8, 256>}]} {
    %c0 = arith.constant 0 : index
    %c0_0 = arith.constant 0 : index
    %0 = vector.load %arg1[%c0, %c0_0] : memref<8x256xf32, #tpu.memory_space<vmem>>, vector<8x256xf32>
    %cst = arith.constant dense<0.000000e+00> : vector<8xf32>
    %1 = vector.multi_reduction <add>, %0, %cst [1] : vector<8x256xf32> to vector<8xf32>
    %2 = vector.shape_cast %1 : vector<8xf32> to vector<8x1xf32>
    %cst_1 = arith.constant 2.560000e+02 : f32
    %3 = vector.broadcast %cst_1 : f32 to vector<8x1xf32>
    %4 = arith.divf %2, %3 : vector<8x1xf32>
    %5 = vector.broadcast %4 : vector<8x1xf32> to vector<8x256xf32>
    %6 = arith.subf %0, %5 : vector<8x256xf32>
    %7 = arith.mulf %6, %6 : vector<8x256xf32>
    %cst_2 = arith.constant dense<0.000000e+00> : vector<8xf32>
    %8 = vector.multi_reduction <add>, %7, %cst_2 [1] : vector<8x256xf32> to vector<8xf32>
    %9 = vector.shape_cast %8 : vector<8xf32> to vector<8x1xf32>
    %cst_3 = arith.constant 0.00392156886 : f32
    %10 = vector.broadcast %cst_3 : f32 to vector<8x1xf32>
    %11 = arith.mulf %9, %10 : vector<8x1xf32>
    %cst_4 = arith.constant 9.99999974E-6 : f32
    %12 = vector.broadcast %cst_4 : f32 to vector<8x1xf32>
    %13 = arith.addf %11, %12 : vector<8x1xf32>
    %14 = math.sqrt %13 : vector<8x1xf32>
    %c0_5 = arith.constant 0 : index
    %c0_6 = arith.constant 0 : index
    %15 = vector.load %arg2[%c0_5, %c0_6] : memref<10x16xf32, #tpu.memory_space<vmem>>, vector<10x16xf32>
    %16 = vector.extract_strided_slice %15 {offsets = [0, 0], sizes = [1, 16], strides = [1, 1]} : vector<10x16xf32> to vector<1x16xf32>
    %17 = vector.extract_strided_slice %15 {offsets = [1, 0], sizes = [1, 16], strides = [1, 1]} : vector<10x16xf32> to vector<1x16xf32>
    %18 = vector.extract_strided_slice %15 {offsets = [2, 0], sizes = [1, 16], strides = [1, 1]} : vector<10x16xf32> to vector<1x16xf32>
    %19 = vector.extract_strided_slice %15 {offsets = [3, 0], sizes = [1, 16], strides = [1, 1]} : vector<10x16xf32> to vector<1x16xf32>
    %20 = vector.extract_strided_slice %15 {offsets = [4, 0], sizes = [1, 16], strides = [1, 1]} : vector<10x16xf32> to vector<1x16xf32>
    %21 = vector.extract_strided_slice %15 {offsets = [5, 0], sizes = [1, 16], strides = [1, 1]} : vector<10x16xf32> to vector<1x16xf32>
    %22 = vector.extract_strided_slice %15 {offsets = [6, 0], sizes = [1, 16], strides = [1, 1]} : vector<10x16xf32> to vector<1x16xf32>
    %23 = vector.extract_strided_slice %15 {offsets = [7, 0], sizes = [1, 16], strides = [1, 1]} : vector<10x16xf32> to vector<1x16xf32>
    %24 = vector.extract_strided_slice %15 {offsets = [8, 0], sizes = [1, 1], strides = [1, 1]} : vector<10x16xf32> to vector<1x1xf32>
    %25 = vector.extract_strided_slice %15 {offsets = [9, 0], sizes = [1, 1], strides = [1, 1]} : vector<10x16xf32> to vector<1x1xf32>
    %26 = vector.broadcast %4 : vector<8x1xf32> to vector<8x16xf32>
    %27 = vector.broadcast %16 : vector<1x16xf32> to vector<8x16xf32>
    %28 = arith.mulf %26, %27 : vector<8x16xf32>
    %29 = vector.broadcast %14 : vector<8x1xf32> to vector<8x16xf32>
    %30 = vector.broadcast %17 : vector<1x16xf32> to vector<8x16xf32>
    %31 = arith.mulf %29, %30 : vector<8x16xf32>
    %32 = arith.addf %28, %31 : vector<8x16xf32>
    %33 = vector.broadcast %18 : vector<1x16xf32> to vector<8x16xf32>
    %34 = arith.addf %32, %33 : vector<8x16xf32>
    %cst_7 = arith.constant 0.000000e+00 : f32
    %35 = vector.broadcast %cst_7 : f32 to vector<8x16xf32>
    %36 = arith.maximumf %34, %35 : vector<8x16xf32>
    %37 = vector.broadcast %19 : vector<1x16xf32> to vector<8x16xf32>
    %38 = arith.mulf %36, %37 : vector<8x16xf32>
    %cst_8 = arith.constant dense<0.000000e+00> : vector<8xf32>
    %39 = vector.multi_reduction <add>, %38, %cst_8 [1] : vector<8x16xf32> to vector<8xf32>
    %40 = vector.shape_cast %39 : vector<8xf32> to vector<8x1xf32>
    %41 = vector.broadcast %24 : vector<1x1xf32> to vector<8x1xf32>
    %42 = arith.addf %40, %41 : vector<8x1xf32>
    %43 = arith.negf %42 : vector<8x1xf32>
    %44 = math.exp %43 : vector<8x1xf32>
    %cst_9 = arith.constant 1.000000e+00 : f32
    %45 = vector.broadcast %cst_9 : f32 to vector<8x1xf32>
    %46 = arith.addf %45, %44 : vector<8x1xf32>
    %47 = arith.divf %45, %46 : vector<8x1xf32>
    %48 = vector.broadcast %4 : vector<8x1xf32> to vector<8x16xf32>
    %49 = vector.broadcast %20 : vector<1x16xf32> to vector<8x16xf32>
    %50 = arith.mulf %48, %49 : vector<8x16xf32>
    %51 = vector.broadcast %14 : vector<8x1xf32> to vector<8x16xf32>
    %52 = vector.broadcast %21 : vector<1x16xf32> to vector<8x16xf32>
    %53 = arith.mulf %51, %52 : vector<8x16xf32>
    %54 = arith.addf %50, %53 : vector<8x16xf32>
    %55 = vector.broadcast %22 : vector<1x16xf32> to vector<8x16xf32>
    %56 = arith.addf %54, %55 : vector<8x16xf32>
    %cst_10 = arith.constant 0.000000e+00 : f32
    %57 = vector.broadcast %cst_10 : f32 to vector<8x16xf32>
    %58 = arith.maximumf %56, %57 : vector<8x16xf32>
    %59 = vector.broadcast %23 : vector<1x16xf32> to vector<8x16xf32>
    %60 = arith.mulf %58, %59 : vector<8x16xf32>
    %cst_11 = arith.constant dense<0.000000e+00> : vector<8xf32>
    %61 = vector.multi_reduction <add>, %60, %cst_11 [1] : vector<8x16xf32> to vector<8xf32>
    %62 = vector.shape_cast %61 : vector<8xf32> to vector<8x1xf32>
    %63 = vector.broadcast %25 : vector<1x1xf32> to vector<8x1xf32>
    %64 = arith.addf %62, %63 : vector<8x1xf32>
    %65 = arith.negf %64 : vector<8x1xf32>
    %66 = math.exp %65 : vector<8x1xf32>
    %cst_12 = arith.constant 1.000000e+00 : f32
    %67 = vector.broadcast %cst_12 : f32 to vector<8x1xf32>
    %68 = arith.addf %67, %66 : vector<8x1xf32>
    %69 = arith.divf %67, %68 : vector<8x1xf32>
    %70 = vector.broadcast %69 : vector<8x1xf32> to vector<8x256xf32>
    %71 = arith.mulf %0, %70 : vector<8x256xf32>
    %72 = arith.subf %47, %69 : vector<8x1xf32>
    %73 = arith.mulf %4, %72 : vector<8x1xf32>
    %74 = vector.broadcast %73 : vector<8x1xf32> to vector<8x256xf32>
    %75 = arith.addf %71, %74 : vector<8x256xf32>
    %c0_13 = arith.constant 0 : index
    %c0_14 = arith.constant 0 : index
    %76 = vector.load %arg3[%c0_13, %c0_14] : memref<8x256xf32, #tpu.memory_space<vmem>>, vector<8x256xf32>
    tpu.vector_store %arg3[%c0_13, %c0_14], %75 {strides = array<i32>} : memref<8x256xf32, #tpu.memory_space<vmem>>, vector<8x256xf32>,
    return
  }
  func.func @transform_0(%arg0: i32) -> (i32, i32) {
    %c0_i32 = arith.constant 0 : i32
    %c0_i32_0 = arith.constant 0 : i32
    return %arg0, %c0_i32 : i32, i32
  }
  func.func @transform_1(%arg0: i32) -> (i32, i32) {
    %c0_i32 = arith.constant 0 : i32
    %c0_i32_0 = arith.constant 0 : i32
    %c0_i32_1 = arith.constant 0 : i32
    return %c0_i32, %c0_i32_0 : i32, i32
  }
  func.func @transform_2(%arg0: i32) -> (i32, i32) {
    %c0_i32 = arith.constant 0 : i32
    %c0_i32_0 = arith.constant 0 : i32
    return %arg0, %c0_i32 : i32, i32
  }
}

</mosaic_0001>

<bundles_post_ra>
// kernel: tpu_custom_call.1
= control target key start
LH: loop header
LB: loop body
LE: loop exit
PB: predicated region body
PF: predicated region fallthrough
CT: control target
= control target key end

     0   :  { %7 = vsyncpa [#allocation3], 0  ;;  %s303_s0 = inlined_call_operand.hbm [shape: f32[8,256], index: 0, kind: input, shape index: {}]   ;;  %s304_s1 = inlined_call_operand.hbm [shape: f32[10,16], index: 1, kind: input, shape index: {}]   ;;  %s305_s2 = inlined_call_operand.hbm [shape: f32[8,256], index: 2, kind: output, shape index: {}]  }
   0x1   :  { %8 = vsyncpa [#allocation6], 0 }
   0x2   :  { %9 = vsyncpa [#allocation4], 0  ;;  %s256_s9 = smov [#allocation2]   ;;  %s257_s11 = smov [#allocation5]  }
   0x3   :  { %s16_s10 = sshll.u32 %s256_s9, 4  ;;  %s25_s12 = sshll.u32 %s257_s11, 4  ;;  %s17_s10 = int_to_ptr.vmem [resolvable:$true] %s16_s10  ;;  %s26_s12 = int_to_ptr.vmem [resolvable:$true] %s25_s12 }
   0x4   :  { %s198_s13 = scalar_lea.vmem %s17_s10, 256  ;;  %p203_p1 = scmp.lt.s32.totalorder %s17_s10, %s17_s10 }
   0x5   :  { %p199_p0 = scmp.ne.s32.totalorder %s17_s10, %s198_s13  ;;  %p204_p2 = scmp.lt.s32.totalorder %s198_s13, %s198_s13 }
   0x7   :  { %p205_p3 = por %p204_p2, %p203_p1 }
   0x9   :  { %p206_p4 = pnand %p205_p3, %p199_p0 }
   0xb   :  { %209 = shalt.err (!%p206_p4)
}
   0xc   :  { %19 = dma.hbm_to_vmem [thread:$0]  %s303_s0, 256, %s17_s10, [#allocation3]  }
   0xd   :  { %s218_s16 = scalar_lea.vmem %s26_s12, 256  ;;  %p223_p6 = scmp.lt.s32.totalorder %s26_s12, %s26_s12 }
   0xe   :  { %p219_p5 = scmp.ne.s32.totalorder %s26_s12, %s218_s16  ;;  %p224_p7 = scmp.lt.s32.totalorder %s218_s16, %s218_s16 }
  0x10   :  { %p225_p8 = por %p224_p7, %p223_p6 }
  0x12   :  { %p226_p9 = pnand %p225_p8, %p219_p5 }
  0x14   :  { %229 = shalt.err (!%p226_p9)
}
  0x15   :  { %s258_s17 = smov 128   ;;  %s259_s18 = smov 8  }
  0x16   :  { %31 = dma.hbm_to_vmem [thread:$0]  %s304_s1, 256, %s26_s12, [#allocation6], %s258_s17, %s258_s17, %s259_s18  }
  0x17   :  { %250 = dma.done.wait [#allocation3], 256  }
  0x18   :  { %251 = vsyncadd [#allocation3], 4294967040 }
  0x19   :  { %252 = dma.done.wait [#allocation6], 256  }
  0x1a   :  { %253 = vsyncadd [#allocation6], 4294967040  ;;  %v283_v0 = vld [vmem:[#allocation2] sm:$0xff]  ;;  %v285_v1 = vld [vmem:[#allocation2 + $0x8] sm:$0xff]  ;;  %v63_v13 = vlaneseq  ;;  %vm85_vm2 = vcmask 130048   ;;  %v260_v51 = vmov 0  }
  0x1b   :  { %v40_v2 = vadd.f32 %v285_v1, %v283_v0  ;;  %v61_v17 = vld [vmem:[#allocation5] sm:$0xff]  ;;  %178 = vset.pattern.permute.xlu0 %v260_v51  ;;  %179 = vset.pattern.permute.xlu1 %v260_v51  ;;  %v62_v52 = vld [vmem:[#allocation5 + $0x8] sm:$0x3]  ;;  %s261_s0 = smov [#allocation7]  }
  0x1c   :  { %v64_v14 = vshrl.u32 %v63_v13, 7  ;;  %s160_s1 = sshll.u32 %s261_s0, 4  ;;  %s161_s1 = int_to_ptr.vmem [resolvable:$true] %s160_s1 }
  0x1d   :  { %41 = vadd.xlane.f32.xlu0 %v40_v2  ;;  %s230_s21 = scalar_lea.vmem %s161_s1, 256  ;;  %p235_p11 = scmp.lt.s32.totalorder %s161_s1, %s161_s1 }
  0x1e   :  { %v65_v15 = vsub.s32 0, %v64_v14  ;;  %v102_v16 = vsub.s32 4, %v64_v14  ;;  %v70_v18 = vsub.s32 1, %v64_v14  ;;  %v107_v19 = vsub.s32 5, %v64_v14  ;;  %p231_p10 = scmp.ne.s32.totalorder %s161_s1, %s230_s21  ;;  %p236_p12 = scmp.lt.s32.totalorder %s230_s21, %s230_s21 }
  0x1f   :  { %v76_v22 = vsub.s32 2, %v64_v14  ;;  %v113_v27 = vsub.s32 6, %v64_v14  ;;  %v82_v35 = vsub.s32 3, %v64_v14  ;;  %v119_v40 = vsub.s32 7, %v64_v14 }
  0x20   :  { %v66_v21 = vrot.slane %v61_v17, %v65_v15  ;;  %v103_v23 = vrot.slane %v61_v17, %v102_v16  ;;  %v71_v25 = vrot.slane %v61_v17, %v70_v18  ;;  %v108_v26 = vrot.slane %v61_v17, %v107_v19  ;;  %p237_p13 = por %p236_p12, %p235_p11 }
  0x21   :  { %v77_v32 = vrot.slane %v61_v17, %v76_v22  ;;  %v114_v37 = vrot.slane %v61_v17, %v113_v27  ;;  %v83_v42 = vrot.slane %v61_v17, %v82_v35  ;;  %v120_v46 = vrot.slane %v61_v17, %v119_v40 }
  0x22   :  { %v92_v53 = vrot.slane %v62_v52, %v65_v15  ;;  %v128_v56 = vrot.slane %v62_v52, %v70_v18  ;;  %p238_p0 = pnand %p237_p13, %p231_p10 }
  0xa6   :  { %v42_v3 = vpop.xlane.xlu0 %41 }
  0xa7   :  { %v289_v4 = vmul.f32 0.00390625, %v42_v3 }
  0xa9   :  { %v45_v5 = vsub.f32 %v283_v0, %v289_v4  ;;  %v46_v6 = vsub.f32 %v285_v1, %v289_v4  ;;  %v67_v31 = vmul.f32 %v66_v21, %v289_v4  ;;  %v104_v33 = vmul.f32 %v103_v23, %v289_v4 }
  0xab   :  { %v47_v7 = vmul.f32 %v45_v5, %v45_v5  ;;  %v48_v8 = vmul.f32 %v46_v6, %v46_v6 }
  0xad   :  { %v49_v9 = vadd.f32 %v48_v8, %v47_v7 }
  0xaf   :  { %50 = vadd.xlane.f32.xlu0 %v49_v9 }
 0x138   :  { %v51_v10 = vpop.xlane.xlu0 %50 }
 0x139   :  { %v52_v11 = vmul.f32 0.003921569, %v51_v10 }
 0x13b   :  { %v53_v12 = vadd.f32 1e-05, %v52_v11 }
 0x13d   :  { %180 = vrsqrt.f32 %v53_v12  ;;  %vm56_vm0 = vcmp.eq.f32.partialorder %v53_v12, inf  ;;  %v59_v28 = vand.u32 2147483648, %v53_v12  ;;  %vm58_vm1 = vcmp.eq.f32.partialorder %v53_v12, 0.0 }
 0x14a   :  { %v181_v20 = vpop.eup %180 }
 0x14b   :  { %v55_v24 = vmul.f32 %v181_v20, %v53_v12 }
 0x14d   :  { %v57_v29 = vsel %vm56_vm0, %v53_v12, %v55_v24 }
 0x14e   :  { %v60_v30 = vsel %vm58_vm1, %v59_v28, %v57_v29 }
 0x14f   :  { %v72_v34 = vmul.f32 %v71_v25, %v60_v30  ;;  %v109_v36 = vmul.f32 %v108_v26, %v60_v30 }
 0x151   :  { %v73_v38 = vadd.f32 %v72_v34, %v67_v31  ;;  %v110_v39 = vadd.f32 %v109_v36, %v104_v33 }
 0x153   :  { %v78_v41 = vadd.f32 %v77_v32, %v73_v38  ;;  %v115_v43 = vadd.f32 %v114_v37, %v110_v39 }
 0x155   :  { %v79_v44 = vmax.f32 %v78_v41, 0.0  ;;  %v116_v45 = vmax.f32 %v115_v43, 0.0 }
 0x157   :  { %v84_v47 = vmul.f32 %v83_v42, %v79_v44  ;;  %v121_v49 = vmul.f32 %v120_v46, %v116_v45 }
 0x159   :  { %v86_v48 = vsel %vm85_vm2, %v84_v47, 0.0  ;;  %v122_v50 = vsel %vm85_vm2, %v121_v49, 0.0 }
 0x15a   :  { %87 = vadd.xlane.f32.xlu1 %v86_v48 }
 0x15e   :  { %123 = vadd.xlane.f32.xlu1 %v122_v50 }
 0x1e3   :  { %v88_v54 = vpop.xlane.xlu1 %87 }
 0x1e4   :  { %v93_v55 = vadd.f32 %v92_v53, %v88_v54 }
 0x1e6   :  { %v170_v57 = vmul.f32 -1.442695, %v93_v55 }
 0x1e7   :  { %v124_v58 = vpop.xlane.xlu1 %123 }
 0x1e8   :  { %182 = vpow2.f32 %v170_v57  ;;  %v129_v59 = vadd.f32 %v128_v56, %v124_v58 }
 0x1ea   :  { %v171_v60 = vmul.f32 -1.442695, %v129_v59 }
 0x1ec   :  { %184 = vpow2.f32 %v171_v60 }
 0x1f5   :  { %v183_v61 = vpop.eup %182 }
 0x1f6   :  { %v97_v62 = vadd.f32 1.0, %v183_v61 }
 0x1f8   :  { %186 = vrcp.f32 %v97_v62 }
 0x1f9   :  { %v185_v63 = vpop.eup %184 }
 0x1fa   :  { %v133_v2 = vadd.f32 1.0, %v185_v63 }
 0x1fc   :  { %188 = vrcp.f32 %v133_v2 }
 0x205   :  { %v187_v3 = vpop.eup %186 }
 0x209   :  { %v189_v5 = vpop.eup %188 }
 0x20a   :  { %138 = vperm.xlu0 %178, %v189_v5   ;;  %v143_v6 = vsub.f32 %v187_v3, %v189_v5 }
 0x20c   :  { %v144_v7 = vmul.f32 %v143_v6, %v289_v4 }
 0x20e   :  { %147 = vperm.xlu1 %179, %v144_v7  }
 0x285   :  { %v139_v8 = vpop.permute.xlu0 %138 }
 0x286   :  { %v141_v9 = vmul.f32 %v139_v8, %v283_v0  ;;  %v142_v10 = vmul.f32 %v139_v8, %v285_v1 }
 0x289   :  { %v148_v11 = vpop.permute.xlu1 %147 }
 0x28a   :  { %v150_v12 = vadd.f32 %v148_v11, %v141_v9  ;;  %v151_v13 = vadd.f32 %v148_v11, %v142_v10 }
 0x28c   :  { %152 = vst [vmem:[#allocation7] sm:$0xff] %v150_v12  ;;  %153 = vst [vmem:[#allocation7 + $0x8] sm:$0xff] %v151_v13 }
 0x28d   :  { %241 = shalt.err (!%p238_p0)
}
 0x28e   :  { %163 = dma.vmem_to_hbm [thread:$0]  %s161_s1, 256, %s305_s2, [#allocation4]  }
 0x28f   :  { %254 = dma.done.wait [#allocation4], 256  }
 0x290   :  { %255 = vsyncadd [#allocation4], 4294967040 }
 0x291   :  { %167 = vsyncpa [#allocation3], 1 }
 0x292   :  { %168 = vsyncpa [#allocation6], 1 }
 0x293   :  { %169 = vsyncpa [#allocation4], 1 }

</bundles_post_ra>
